<compile_context>
chip_gen: v6e
topology: v6e:2x2x1
jax: 0.10.0
libtpu: 0.0.40
codegen_flags: <defaults>
</compile_context>

<pallas_src>
import jax
import jax.numpy as jnp
from jax.experimental import pallas as pl
from jax.experimental.pallas import tpu as pltpu

EPS = 1e-5


def _round_up(v, m):
    return m * ((v + m - 1) // m)


def nalu_kernel(x_ref, wag_ref, wm_ref, out_ref):
    """Processes one batch tile.

    x_ref   : (TB, IN)    f32       pipelined input tile (batch grid axis)
    wag_ref : (IN, 2*OP)  f32/bf16  fused [nacW.T | G.T], VMEM-resident (1 buffer)
    wm_ref  : (IN, OP)    f32/bf16  W.T, VMEM-resident (1 buffer)
    out_ref : (TB, OP)    f32       lane-dense output tile (OP % 128 == 0)
    """
    x = x_ref[...]                                               # (TB, IN) f32
    op = out_ref.shape[-1]

    # --- fused NAC + gate matmul: one MXU pass over [nacW.T | G.T] ----------
    ag = jnp.dot(x.astype(wag_ref.dtype), wag_ref[...],
                 preferred_element_type=jnp.float32)             # (TB, 2*OP)
    a = ag[:, :op]                                               # (TB, OP)
    g = jax.nn.sigmoid(ag[:, op:])                               # (TB, OP)

    # --- multiplicative branch ----------------------------------------------
    # log / exp / combine stay f32 (EUP/VPU); the matmul operands may be bf16
    # (MXU-native on all of v5e/v6e/v7x) with an f32 accumulate.
    log_in = jnp.log(jnp.abs(x) + EPS).astype(wm_ref.dtype)
    m = jnp.exp(jnp.dot(log_in, wm_ref[...],
                        preferred_element_type=jnp.float32))     # (TB, OP)

    # g*a + (1-g)*m == m + g*(a-m): one fewer multiply, no 1.0 broadcast.
    out_ref[...] = (m + g * (a - m)).astype(out_ref.dtype)


def nalu_forward(x, G, W, W_hat, M_hat, *, block_b=512,
                 matmul_dtype=None, m_matmul_dtype=None):
    """NALU forward. x: (B, IN); G, W, W_hat, M_hat: (OUT, IN) (PyTorch layout).

    matmul_dtype   : operand dtype for the fused NAC+gate matmul. bf16 is
                     MXU-native on v5e/v6e/v7x (~3x fewer passes than emulated
                     f32), but it also casts the NAC additive branch; leave
                     None if NAC near-exact add/sub matters.
    m_matmul_dtype : operand dtype for the log-space (multiplicative) matmul.
                     bf16 recommended on all generations; accumulate stays f32.
    block_b        : batch tile size (multiple of 8). 512+ amortizes the
                     ~0.35 us/grid-step overhead; raise further on v5e/v6e
                     (128 MiB VMEM) for very large B.
    """
    B, IN = x.shape
    OUT = G.shape[0]
    assert block_b > 0 and block_b % 8 == 0, "block_b must be a positive multiple of 8"

    # --- weight prep (hoisted out of the kernel) -----------------------------
    nac_w = jnp.tanh(W_hat) * jax.nn.sigmoid(M_hat)              # (OUT, IN)

    OP = 128 * pl.cdiv(OUT, 128)                                 # lane-dense width
    pad_o = OP - OUT
    nac_wT = jnp.pad(nac_w.T, ((0, 0), (0, pad_o)))              # (IN, OP)
    gT = jnp.pad(G.T, ((0, 0), (0, pad_o)))                      # (IN, OP)
    wag = jnp.concatenate([nac_wT, gT], axis=1)                  # (IN, 2*OP)
    wm = jnp.pad(W.T, ((0, 0), (0, pad_o)))                      # (IN, OP)
    if matmul_dtype is not None:
        wag = wag.astype(matmul_dtype)
    if m_matmul_dtype is not None:
        wm = wm.astype(m_matmul_dtype)

    # --- batch tiling ---------------------------------------------------------
    # Guarantee >= 2 grid steps when B >= 16 so dimension_semantics=("parallel",)
    # actually splits work across v7x's two TensorCores (no-op on v5e/v6e).
    # The last batch block may be ragged; Pallas masks its out-of-bounds writes
    # and the garbage rows only affect their own (discarded) output rows.
    if B > block_b:
        TB = block_b
    elif B >= 16:
        TB = min(block_b, _round_up(pl.cdiv(B, 2), 8))
    else:
        TB = B                                                   # single full block
    grid = (pl.cdiv(B, TB),)

    # --- VMEM budget computed from the actual buffers -------------------------
    x_item = jnp.dtype(x.dtype).itemsize
    pipelined = 2 * TB * IN * x_item + 2 * TB * OP * x_item      # x/out double-buffered
    resident = (IN * 2 * OP * jnp.dtype(wag.dtype).itemsize      # weights single-buffered
                + IN * OP * jnp.dtype(wm.dtype).itemsize)
    interm = 6 * TB * OP * 4 + 2 * TB * IN * 4                   # spill allowance (ag/a/g/m/log_in)
    vmem_limit = max(32 << 20,
                     min(int(1.25 * (pipelined + resident + interm)) + (4 << 20),
                         100 << 20))

    out = pl.pallas_call(
        nalu_kernel,
        out_shape=jax.ShapeDtypeStruct((B, OP), x.dtype),
        grid=grid,
        in_specs=[
            pl.BlockSpec((TB, IN), lambda i: (i, 0)),            # pipelined x tiles
            pl.BlockSpec(memory_space=pltpu.MemorySpace.VMEM),   # whole wag, 1 buffer
            pl.BlockSpec(memory_space=pltpu.MemorySpace.VMEM),   # whole wm, 1 buffer
        ],
        out_specs=pl.BlockSpec((TB, OP), lambda i: (i, 0)),      # lane-dense tile
        compiler_params=pltpu.CompilerParams(
            dimension_semantics=("parallel",),
            vmem_limit_bytes=vmem_limit,
        ),
    )(x, wag, wm)

    # Only the lane padding needs slicing (batch is exact; no wrapper-side pad).
    return out if pad_o == 0 else out[:, :OUT]


def nalu_reference(x, G, W, W_hat, M_hat):
    nac_w = jnp.tanh(W_hat) * jax.nn.sigmoid(M_hat)
    a = x @ nac_w.T
    g = jax.nn.sigmoid(x @ G.T)
    m = jnp.exp(jnp.log(jnp.abs(x) + EPS) @ W.T)
    return g * a + (1.0 - g) * m


def xavier_uniform(key, out_f, in_f, dtype=jnp.float32):
    bound = (6.0 / (in_f + out_f)) ** 0.5
    return jax.random.uniform(key, (out_f, in_f), dtype, -bound, bound)


if __name__ == "__main__":
    # Small shapes consistent with the module: inputs=64, outputs=32.
    B, IN, OUT = 8, 64, 32

    key = jax.random.PRNGKey(0)
    kx, kg, kw, kwh, kmh, kx2 = jax.random.split(key, 6)

    x = jax.random.normal(kx, (B, IN), jnp.float32)
    G = xavier_uniform(kg, OUT, IN)
    W = xavier_uniform(kw, OUT, IN)
    W_hat = xavier_uniform(kwh, OUT, IN)   # NeuralAccumulator params
    M_hat = xavier_uniform(kmh, OUT, IN)

    ref = nalu_reference(x, G, W, W_hat, M_hat)

    # Exact f32 path (NAC additive branch stays exact).
    out = jax.block_until_ready(nalu_forward(x, G, W, W_hat, M_hat))
    assert out.shape == (B, OUT)
    assert jnp.allclose(out, ref, atol=1e-4, rtol=1e-4), "f32 mismatch vs reference"

    # bf16 operands for the multiplicative branch only (recommended fast path
    # on v5e/v6e/v7x); NAC + gate matmul stays f32 so add/sub stays near-exact.
    out_m = jax.block_until_ready(
        nalu_forward(x, G, W, W_hat, M_hat, m_matmul_dtype=jnp.bfloat16))
    assert out_m.shape == (B, OUT)
    assert jnp.allclose(out_m, ref, atol=5e-2, rtol=5e-2), "bf16-m mismatch vs reference"

    # Full bf16-operand path (fastest; NAC exactness relaxed).
    out_bf = jax.block_until_ready(
        nalu_forward(x, G, W, W_hat, M_hat,
                     matmul_dtype=jnp.bfloat16, m_matmul_dtype=jnp.bfloat16))
    assert out_bf.shape == (B, OUT)
    assert jnp.allclose(out_bf, ref, atol=5e-2, rtol=5e-2), "bf16 mismatch vs reference"

    # Larger, non-divisible batch: exercises the >=2-step grid (both v7x TCs)
    # and the ragged last batch block (no wrapper-side pad of x).
    B2 = 300
    x2 = jax.random.normal(kx2, (B2, IN), jnp.float32)
    ref2 = nalu_reference(x2, G, W, W_hat, M_hat)
    out2 = jax.block_until_ready(nalu_forward(x2, G, W, W_hat, M_hat))
    assert out2.shape == (B2, OUT)
    assert jnp.allclose(out2, ref2, atol=1e-4, rtol=1e-4), "ragged-batch mismatch vs reference"

    print("KERNEL_OK")
</pallas_src>

<mosaic_0001>
module attributes {stable_mosaic.version = 11 : i64} {
  func.func @nalu_kernel(%arg0: i32, %arg1: memref<8x64xf32, #tpu.memory_space<vmem>>, %arg2: memref<64x256xf32, #tpu.memory_space<vmem>>, %arg3: memref<64x128xf32, #tpu.memory_space<vmem>>, %arg4: memref<8x128xf32, #tpu.memory_space<vmem>>) attributes {dimension_semantics = [#tpu.dimension_semantics<parallel>], iteration_bounds = array<i64: 1>, scalar_prefetch = 0 : i64, scratch_operands = 0 : i64, tpu.core_type = #tpu.core_type<tc>, window_params = [{transform_indices = @transform_0, window_bounds = array<i64: 8, 64>}, {pipeline_mode = #tpu.pipeline_mode<synchronous>, transform_indices = @transform_1, window_bounds = array<i64: 64, 256>}, {pipeline_mode = #tpu.pipeline_mode<synchronous>, transform_indices = @transform_2, window_bounds = array<i64: 64, 128>}, {transform_indices = @transform_3, window_bounds = array<i64: 8, 128>}]} {
    %c0 = arith.constant 0 : index
    %c0_0 = arith.constant 0 : index
    %0 = vector.load %arg1[%c0, %c0_0] : memref<8x64xf32, #tpu.memory_space<vmem>>, vector<8x64xf32>
    %c0_1 = arith.constant 0 : index
    %c0_2 = arith.constant 0 : index
    %1 = vector.load %arg2[%c0_1, %c0_2] : memref<64x256xf32, #tpu.memory_space<vmem>>, vector<64x256xf32>
    %cst = arith.constant dense<0.000000e+00> : vector<8x256xf32>
    %2 = tpu.matmul %0, %1, %cst {dimension_numbers = #tpu.dot_dimension_numbers<[1], [0], [0], [1], [0, 0, 1, 1], [], []>} : vector<8x64xf32>, vector<64x256xf32>, vector<8x256xf32> -> vector<8x256xf32>
    %3 = vector.extract_strided_slice %2 {offsets = [0, 0], sizes = [8, 128], strides = [1, 1]} : vector<8x256xf32> to vector<8x128xf32>
    %4 = vector.extract_strided_slice %2 {offsets = [0, 128], sizes = [8, 128], strides = [1, 1]} : vector<8x256xf32> to vector<8x128xf32>
    %5 = arith.negf %4 : vector<8x128xf32>
    %6 = math.exp %5 : vector<8x128xf32>
    %cst_3 = arith.constant 1.000000e+00 : f32
    %7 = vector.broadcast %cst_3 : f32 to vector<8x128xf32>
    %8 = arith.addf %7, %6 : vector<8x128xf32>
    %9 = arith.divf %7, %8 : vector<8x128xf32>
    %10 = math.absf %0 : vector<8x64xf32>
    %cst_4 = arith.constant 9.99999974E-6 : f32
    %11 = vector.broadcast %cst_4 : f32 to vector<8x64xf32>
    %12 = arith.addf %10, %11 : vector<8x64xf32>
    %13 = math.log %12 : vector<8x64xf32>
    %c0_5 = arith.constant 0 : index
    %c0_6 = arith.constant 0 : index
    %14 = vector.load %arg3[%c0_5, %c0_6] : memref<64x128xf32, #tpu.memory_space<vmem>>, vector<64x128xf32>
    %cst_7 = arith.constant dense<0.000000e+00> : vector<8x128xf32>
    %15 = tpu.matmul %13, %14, %cst_7 {dimension_numbers = #tpu.dot_dimension_numbers<[1], [0], [0], [1], [0, 0, 1, 1], [], []>} : vector<8x64xf32>, vector<64x128xf32>, vector<8x128xf32> -> vector<8x128xf32>
    %16 = math.exp %15 : vector<8x128xf32>
    %17 = arith.subf %3, %16 : vector<8x128xf32>
    %18 = arith.mulf %9, %17 : vector<8x128xf32>
    %19 = arith.addf %16, %18 : vector<8x128xf32>
    %c0_8 = arith.constant 0 : index
    %c0_9 = arith.constant 0 : index
    %20 = vector.load %arg4[%c0_8, %c0_9] : memref<8x128xf32, #tpu.memory_space<vmem>>, vector<8x128xf32>
    tpu.vector_store %arg4[%c0_8, %c0_9], %19 {strides = array<i32>} : memref<8x128xf32, #tpu.memory_space<vmem>>, vector<8x128xf32>,
    return
  }
  func.func @transform_0(%arg0: i32) -> (i32, i32) {
    %c0_i32 = arith.constant 0 : i32
    %c0_i32_0 = arith.constant 0 : i32
    return %arg0, %c0_i32 : i32, i32
  }
  func.func @transform_1(%arg0: i32) -> (i32, i32) {
    %c0_i32 = arith.constant 0 : i32
    %c0_i32_0 = arith.constant 0 : i32
    %c0_i32_1 = arith.constant 0 : i32
    return %c0_i32, %c0_i32_0 : i32, i32
  }
  func.func @transform_2(%arg0: i32) -> (i32, i32) {
    %c0_i32 = arith.constant 0 : i32
    %c0_i32_0 = arith.constant 0 : i32
    %c0_i32_1 = arith.constant 0 : i32
    return %c0_i32, %c0_i32_0 : i32, i32
  }
  func.func @transform_3(%arg0: i32) -> (i32, i32) {
    %c0_i32 = arith.constant 0 : i32
    %c0_i32_0 = arith.constant 0 : i32
    return %arg0, %c0_i32 : i32, i32
  }
}

</mosaic_0001>

<bundles_post_ra>
// kernel: tpu_custom_call.1
= control target key start
LH: loop header
LB: loop body
LE: loop exit
PB: predicated region body
PF: predicated region fallthrough
CT: control target
= control target key end

     0   :  { %8 = vsyncpa [#allocation3], 0  ;;  %s436_s0 = inlined_call_operand.hbm [shape: f32[8,64], index: 0, kind: input, shape index: {}]   ;;  %s437_s1 = inlined_call_operand.hbm [shape: f32[64,256], index: 1, kind: input, shape index: {}]   ;;  %s438_s2 = inlined_call_operand.hbm [shape: f32[64,128], index: 2, kind: input, shape index: {}]   ;;  %s439_s3 = inlined_call_operand.hbm [shape: f32[8,128], index: 3, kind: output, shape index: {}]  }
   0x1   :  { %9 = vsyncpa [#allocation6], 0 }
   0x2   :  { %10 = vsyncpa [#allocation4], 0  ;;  %s394_s12 = smov [#allocation5]  }
   0x3   :  { %s26_s13 = sshll.u32 %s394_s12, 4  ;;  %s27_s13 = int_to_ptr.vmem [resolvable:$true] %s26_s13 }
   0x4   :  { %s316_s14 = scalar_lea.vmem %s27_s13, 2048  ;;  %p321_p1 = scmp.lt.s32.totalorder %s27_s13, %s27_s13 }
   0x5   :  { %p317_p0 = scmp.ne.s32.totalorder %s27_s13, %s316_s14  ;;  %p322_p2 = scmp.lt.s32.totalorder %s316_s14, %s316_s14 }
   0x7   :  { %p323_p3 = por %p322_p2, %p321_p1 }
   0x9   :  { %p324_p4 = pnand %p323_p3, %p317_p0 }
   0xb   :  { %327 = shalt.err (!%p324_p4)
}
   0xc   :  { %s395_s15 = smov 256   ;;  %s396_s16 = smov 16  }
   0xd   :  { %32 = dma.hbm_to_vmem [thread:$0]  %s437_s1, 2048, %s27_s13, [#allocation6], %s395_s15, %s395_s15, %s396_s16  }
   0xe   :  { %s397_s19 = smov [#allocation2]   ;;  %s398_s21 = smov [#allocation7]  }
   0xf   :  { %s17_s20 = sshll.u32 %s397_s19, 4  ;;  %s38_s22 = sshll.u32 %s398_s21, 4  ;;  %s18_s20 = int_to_ptr.vmem [resolvable:$true] %s17_s20  ;;  %s39_s22 = int_to_ptr.vmem [resolvable:$true] %s38_s22 }
  0x10   :  { %s336_s23 = scalar_lea.vmem %s18_s20, 128  ;;  %p341_p6 = scmp.lt.s32.totalorder %s18_s20, %s18_s20 }
  0x11   :  { %p337_p5 = scmp.ne.s32.totalorder %s18_s20, %s336_s23  ;;  %p342_p7 = scmp.lt.s32.totalorder %s336_s23, %s336_s23 }
  0x13   :  { %p343_p8 = por %p342_p7, %p341_p6 }
  0x15   :  { %p344_p9 = pnand %p343_p8, %p337_p5 }
  0x17   :  { %347 = shalt.err (!%p344_p9)
}
  0x18   :  { %20 = dma.hbm_to_vmem [thread:$0]  %s436_s0, 128, %s18_s20, [#allocation3]  }
  0x19   :  { %s356_s26 = scalar_lea.vmem %s39_s22, 1024  ;;  %p361_p11 = scmp.lt.s32.totalorder %s39_s22, %s39_s22 }
  0x1a   :  { %p357_p10 = scmp.ne.s32.totalorder %s39_s22, %s356_s26  ;;  %p362_p12 = scmp.lt.s32.totalorder %s356_s26, %s356_s26 }
  0x1c   :  { %p363_p13 = por %p362_p12, %p361_p11 }
  0x1e   :  { %p364_p0 = pnand %p363_p13, %p357_p10 }
  0x20   :  { %367 = shalt.err (!%p364_p0)
}
  0x21   :  { %s399_s1 = smov 128   ;;  %s400_s27 = smov 8  }
  0x22   :  { %44 = dma.hbm_to_vmem [thread:$0]  %s438_s2, 1024, %s39_s22, [#allocation6], %s399_s1, %s399_s1, %s400_s27  }
  0x23   :  { %388 = dma.done.wait [#allocation3], 128  }
  0x24   :  { %389 = vsyncadd [#allocation3], 4294967168 }
  0x25   :  { %390 = dma.done.wait [#allocation6], 3072  }
  0x26   :  { %391 = vsyncadd [#allocation6], 4294964224  ;;  %v401_v0 = vmov 0.0   ;;  %vm402_vm0 = vmmov 0   ;;  %v70_v1 = vld [vmem:[#allocation5 + $0x78] sm:$0xff]  ;;  %v69_v2 = vld [vmem:[#allocation5 + $0x70] sm:$0xff] }
  0x27   :  { %271 = vmatprep.subr.mxu1 %v401_v0  ;;  %139 = vmatprep.mubr.f32.mxu0 %v401_v0  ;;  %v68_v3 = vld [vmem:[#allocation5 + $0x68] sm:$0xff]  ;;  %v67_v4 = vld [vmem:[#allocation5 + $0x60] sm:$0xff]  ;;  %v66_v5 = vld [vmem:[#allocation5 + $0x58] sm:$0xff]  ;;  %vm71_vm1 = vcmask 523264   ;;  %s403_s0 = smov [#allocation8]  }
  0x28   :  { %287 = vmatprep.mubr.msk.f32.mxu1 %vm402_vm0, %v401_v0  ;;  %91 = vmatprep.subr.mxu0 %v70_v1  ;;  %v163_v6 = vld [vmem:[#allocation7 + $0x38] sm:$0xff]  ;;  %v65_v7 = vld [vmem:[#allocation5 + $0x50] sm:$0xff]  ;;  %v64_v9 = vld [vmem:[#allocation5 + $0x48] sm:$0xff]  ;;  %s249_s2 = sshll.u32 %s403_s0, 4  ;;  %s250_s2 = int_to_ptr.vmem [resolvable:$true] %s249_s2 }
  0x29   :  { %92 = vmatpush1.msra.mxu0 %v69_v2  ;;  %272 = vmatpush3.msra.mxu1 %v163_v6  ;;  %v162_v8 = vld [vmem:[#allocation7 + $0x30] sm:$0xff]  ;;  %v161_v10 = vld [vmem:[#allocation7 + $0x28] sm:$0xff]  ;;  %v63_v11 = vld [vmem:[#allocation5 + $0x40] sm:$0xff]  ;;  %s368_s30 = scalar_lea.vmem %s250_s2, 128  ;;  %p373_p2 = scmp.lt.s32.totalorder %s250_s2, %s250_s2 }
  0x2a   :  { %93 = vmatprep.subr.mxu0 %v68_v3  ;;  %273 = vmatprep.subr.mxu1 %v401_v0  ;;  %v62_v12 = vld [vmem:[#allocation5 + $0x38] sm:$0xff]  ;;  %v160_v13 = vld [vmem:[#allocation7 + $0x20] sm:$0xff]  ;;  %v61_v14 = vld [vmem:[#allocation5 + $0x30] sm:$0xff]  ;;  %p369_p1 = scmp.ne.s32.totalorder %s250_s2, %s368_s30  ;;  %p374_p3 = scmp.lt.s32.totalorder %s368_s30, %s368_s30 }
  0x2b   :  { %94 = vmatpush1.msra.mxu0 %v67_v4  ;;  %274 = vmatpush3.msra.mxu1 %v162_v8  ;;  %v54_v15 = vld [vmem:[#allocation2] sm:$0xff]  ;;  %v60_v16 = vld [vmem:[#allocation5 + $0x28] sm:$0xff]  ;;  %v59_v19 = vld [vmem:[#allocation5 + $0x20] sm:$0xff] }
  0x2c   :  { %95 = vmatprep.subr.mxu0 %v66_v5  ;;  %275 = vmatprep.subr.mxu1 %v401_v0  ;;  %v159_v17 = vld [vmem:[#allocation7 + $0x18] sm:$0xff]  ;;  %v152_v18 = vand.u32 2147483647, %v54_v15  ;;  %v158_v21 = vld [vmem:[#allocation7 + $0x10] sm:$0xff]  ;;  %v56_v24 = vld [vmem:[#allocation5 + $0x8] sm:$0xff]  ;;  %p375_p4 = por %p374_p3, %p373_p2 }
  0x2d   :  { %96 = vmatpush1.msra.mxu0 %v65_v7  ;;  %276 = vmatpush3.msra.mxu1 %v161_v10  ;;  %v58_v20 = vld [vmem:[#allocation5 + $0x18] sm:$0xff]  ;;  %v57_v23 = vld [vmem:[#allocation5 + $0x10] sm:$0xff]  ;;  %v157_v25 = vld [vmem:[#allocation7 + $0x8] sm:$0xff] }
  0x2e   :  { %97 = vmatprep.subr.mxu0 %v64_v9  ;;  %277 = vmatprep.subr.mxu1 %v401_v0  ;;  %v153_v22 = vadd.f32 1e-05, %v152_v18  ;;  %v55_v26 = vld [vmem:[#allocation5] sm:$0xff]  ;;  %p376_p5 = pnand %p375_p4, %p369_p1 }
  0x2f   :  { %98 = vmatpush1.msra.mxu0 %v63_v11  ;;  %278 = vmatpush3.msra.mxu1 %v160_v13  ;;  %v156_v27 = vld [vmem:[#allocation7] sm:$0xff] }
  0x30   :  { %99 = vmatprep.subr.mxu0 %v62_v12  ;;  %279 = vmatprep.subr.mxu1 %v401_v0  ;;  %300 = vlog2.f32 %v153_v22 }
  0x31   :  { %100 = vmatpush1.msra.mxu0 %v61_v14  ;;  %280 = vmatpush3.msra.mxu1 %v159_v17 }
  0x32   :  { %101 = vmatprep.subr.mxu0 %v60_v16  ;;  %281 = vmatprep.subr.mxu1 %v401_v0 }
  0x33   :  { %102 = vmatpush1.msra.mxu0 %v59_v19  ;;  %282 = vmatpush3.msra.mxu1 %v158_v21 }
  0x34   :  { %103 = vmatprep.subr.mxu0 %v58_v20  ;;  %283 = vmatprep.subr.mxu1 %v401_v0 }
  0x35   :  { %104 = vmatpush1.msra.mxu0 %v57_v23  ;;  %284 = vmatpush3.msra.mxu1 %v157_v25 }
  0x36   :  { %105 = vmatprep.subr.mxu0 %v56_v24  ;;  %285 = vmatprep.subr.mxu1 %v401_v0 }
  0x37   :  { %106 = vmatpush1.msra.mxu0 %v55_v26  ;;  %286 = vmatpush3.msra.mxu1 %v156_v27 }
  0x38   :  { %259 = vmatmul.mubr.msk.f32.vlgmr.msra.gmra.mxu0 %vm71_vm1, %v54_v15 }
  0x3d   :  { %v301_v28 = vpop.eup %300 }
  0x3e   :  { %v155_v29 = vmul.f32 0.6931472, %v301_v28 }
  0x40   :  { %288 = vmatmul.mubr.msk.f32.vlgmr.msra.gmra.mxu1 %vm71_vm1, %v155_v29 }
  0xf8   :  { %v141_v30 = vpop.f32.mrf.mxu0 }
  0xfa   :  { %v143_v31 = vpop.f32.mrf.mxu0 }
  0xfb   :  { %v260_v32 = vmul.f32 -1.442695, %v143_v31 }
  0xfd   :  { %302 = vpow2.f32 %v260_v32 }
 0x100   :  { %v233_v33 = vpop.f32.mrf.mxu1 }
 0x101   :  { %v237_v34 = vmul.f32 1.442695, %v233_v33 }
 0x102   :  { %v289_v35 = vpop.f32.mrf.mxu1 }
 0x103   :  { %304 = vpow2.f32 %v237_v34 }
 0x10a   :  { %v303_v36 = vpop.eup %302 }
 0x10b   :  { %v149_v37 = vadd.f32 1.0, %v303_v36 }
 0x10d   :  { %306 = vrcp.f32 %v149_v37 }
 0x110   :  { %v305_v38 = vpop.eup %304 }
 0x111   :  { %v239_v39 = vsub.f32 %v141_v30, %v305_v38 }
 0x11a   :  { %v307_v40 = vpop.eup %306 }
 0x11b   :  { %v240_v41 = vmul.f32 %v307_v40, %v239_v39 }
 0x11d   :  { %v241_v42 = vadd.f32 %v305_v38, %v240_v41 }
 0x11f   :  { %242 = vst [vmem:[#allocation8] sm:$0xff] %v241_v42 }
 0x120   :  { %379 = shalt.err (!%p376_p5)
}
 0x121   :  { %252 = dma.vmem_to_hbm [thread:$0]  %s250_s2, 128, %s439_s3, [#allocation4]  }
 0x122   :  { %392 = dma.done.wait [#allocation4], 128  }
 0x123   :  { %393 = vsyncadd [#allocation4], 4294967168 }
 0x124   :  { %256 = vsyncpa [#allocation3], 1 }
 0x125   :  { %257 = vsyncpa [#allocation6], 1 }
 0x126   :  { %258 = vsyncpa [#allocation4], 1 }

</bundles_post_ra>
